<compile_context>
chip_gen: v7x
topology: tpu7x:2x2x1
jax: 0.10.0
libtpu: 0.0.40
codegen_flags: <defaults>
</compile_context>

<pallas_src>
import jax
import jax.numpy as jnp
from jax.experimental import pallas as pl
from jax.experimental.pallas import tpu as pltpu

C_COND = 32
C_FEAT = 64


def _sft_kernel(feat_ref, cond_ref, w0_ref, b0_ref, w1_ref, b1_ref, out_ref):
    # feat_ref: (1, 64, tm), cond_ref: (1, 32, tm)
    feat = feat_ref[0].astype(jnp.float32)            # (64, tm)
    cond = cond_ref[0].astype(jnp.float32)            # (32, tm)

    # Stage 1 (both branches fused): (64, 32) @ (32, tm) + bias -> leaky_relu(0.1)
    h = jnp.dot(w0_ref[...], cond, preferred_element_type=jnp.float32) + b0_ref[...]
    h = jnp.where(h >= 0.0, h, 0.1 * h)               # (64, tm)

    # Stage 2 (block-diagonal): (128, 64) @ (64, tm) + bias -> [scale+1 ; shift]
    ss = jnp.dot(w1_ref[...], h, preferred_element_type=jnp.float32) + b1_ref[...]
    scale_p1 = ss[:C_FEAT, :]                         # (64, tm)  ('+1' folded into bias)
    shift = ss[C_FEAT:, :]                            # (64, tm)

    out_ref[0] = (feat * scale_p1 + shift).astype(out_ref.dtype)


def sft_layer(features, conditions, packed_params, *, tm=2048):
    """features: (N, 64, H, W), conditions: (N, 32, H, W). Returns (N, 64, H, W)."""
    N, Cf, H, W = features.shape
    Nc, Cc, Hc, Wc = conditions.shape
    assert Cf == C_FEAT and Cc == C_COND and (N, H, W) == (Nc, Hc, Wc)

    hw = H * W
    # Pixel tile: lane-aligned (multiple of 128), no bigger than the image.
    tm_eff = min(tm, pl.cdiv(hw, 128) * 128)
    hw_pad = pl.cdiv(hw, tm_eff) * tm_eff

    # NCHW -> (N, C, H*W): pure reshape, no data movement.
    feat = features.reshape(N, Cf, hw)
    cond = conditions.reshape(N, Cc, hw)
    if hw_pad != hw:
        feat = jnp.pad(feat, ((0, 0), (0, 0), (0, hw_pad - hw)))
        cond = jnp.pad(cond, ((0, 0), (0, 0), (0, hw_pad - hw)))

    w0, b0, w1, b1 = packed_params
    n_tiles = hw_pad // tm_eff

    def full(a):
        return pl.BlockSpec(a.shape, lambda n, t: (0,) * a.ndim)

    out = pl.pallas_call(
        _sft_kernel,
        out_shape=jax.ShapeDtypeStruct((N, Cf, hw_pad), features.dtype),
        grid_spec=pltpu.PrefetchScalarGridSpec(
            num_scalar_prefetch=0,
            grid=(N, n_tiles),
            in_specs=[
                pl.BlockSpec((1, Cf, tm_eff), lambda n, t: (n, 0, t)),   # features
                pl.BlockSpec((1, Cc, tm_eff), lambda n, t: (n, 0, t)),   # conditions
                full(w0), full(b0), full(w1), full(b1),
            ],
            out_specs=pl.BlockSpec((1, Cf, tm_eff), lambda n, t: (n, 0, t)),
        ),
        compiler_params=pltpu.CompilerParams(
            dimension_semantics=("parallel", "parallel")),
    )(feat, cond, w0, b0, w1, b1)

    if hw_pad != hw:
        out = out[:, :, :hw]
    return out.reshape(N, Cf, H, W)


# ---------------------------------------------------------------------------
# Parameter construction (PyTorch Conv2d(k=1) layout) + host-side packing.
# ---------------------------------------------------------------------------

def init_params(key):
    """Deterministic init in PyTorch Conv2d layout: weight (Cout, Cin, 1, 1), bias (Cout,)."""
    ks = jax.random.split(key, 8)

    def conv_w(k, cout, cin):
        return jax.random.normal(k, (cout, cin, 1, 1), jnp.float32) * (1.0 / jnp.sqrt(cin))

    def conv_b(k, cout):
        return jax.random.normal(k, (cout,), jnp.float32) * 0.01

    return dict(
        ws0=conv_w(ks[0], C_COND, C_COND), bs0=conv_b(ks[1], C_COND),
        ws1=conv_w(ks[2], C_FEAT, C_COND), bs1=conv_b(ks[3], C_FEAT),
        wh0=conv_w(ks[4], C_COND, C_COND), bh0=conv_b(ks[5], C_COND),
        wh1=conv_w(ks[6], C_FEAT, C_COND), bh1=conv_b(ks[7], C_FEAT),
    )


def pack_params(p):
    """Fuse scale/shift branches: one stage-1 matmul, one block-diag stage-2 matmul.
    Also folds the '+1' into the scale bias."""
    ws0 = p["ws0"].reshape(C_COND, C_COND)
    wh0 = p["wh0"].reshape(C_COND, C_COND)
    ws1 = p["ws1"].reshape(C_FEAT, C_COND)
    wh1 = p["wh1"].reshape(C_FEAT, C_COND)

    w0 = jnp.concatenate([ws0, wh0], axis=0)                               # (64, 32)
    b0 = jnp.concatenate([p["bs0"], p["bh0"]], axis=0)[:, None]            # (64, 1)

    zero = jnp.zeros((C_FEAT, C_COND), jnp.float32)
    w1 = jnp.concatenate(
        [jnp.concatenate([ws1, zero], axis=1),
         jnp.concatenate([zero, wh1], axis=1)], axis=0)                    # (128, 64)
    b1 = jnp.concatenate([p["bs1"] + 1.0, p["bh1"]], axis=0)[:, None]      # (128, 1)
    return w0, b0, w1, b1


def _reference(features, conditions, p):
    """Pure-JAX NCHW reference with un-fused params (same math as the PyTorch module)."""
    def conv1x1(x, w, b):
        w2 = w.reshape(w.shape[0], w.shape[1])           # (Cout, Cin)
        y = jnp.einsum('nchw,dc->ndhw', x, w2)
        return y + b[None, :, None, None]

    def lrelu(x):
        return jnp.where(x >= 0.0, x, 0.1 * x)

    scale = conv1x1(lrelu(conv1x1(conditions, p["ws0"], p["bs0"])), p["ws1"], p["bs1"])
    shift = conv1x1(lrelu(conv1x1(conditions, p["wh0"], p["bh0"])), p["wh1"], p["bh1"])
    return features * (scale + 1.0) + shift


if __name__ == "__main__":
    key = jax.random.PRNGKey(0)
    k_feat, k_cond, k_param = jax.random.split(key, 3)

    N, H, W = 2, 16, 16
    features = jax.random.normal(k_feat, (N, C_FEAT, H, W), jnp.float32)
    conditions = jax.random.normal(k_cond, (N, C_COND, H, W), jnp.float32)

    params = init_params(k_param)
    packed = pack_params(params)

    out = sft_layer(features, conditions, packed)
    out = jax.block_until_ready(out)

    ref = jax.block_until_ready(_reference(features, conditions, params))
    assert out.shape == (N, C_FEAT, H, W)
    assert jnp.allclose(out, ref, atol=1e-4, rtol=1e-4), "mismatch vs reference"

    print("KERNEL_OK")
</pallas_src>

<mosaic_0001>
module attributes {stable_mosaic.version = 11 : i64} {
  func.func @_sft_kernel(%arg0: i32, %arg1: i32, %arg2: memref<1x64x256xf32, #tpu.memory_space<vmem>>, %arg3: memref<1x32x256xf32, #tpu.memory_space<vmem>>, %arg4: memref<64x32xf32, #tpu.memory_space<vmem>>, %arg5: memref<64x1xf32, #tpu.memory_space<vmem>>, %arg6: memref<128x64xf32, #tpu.memory_space<vmem>>, %arg7: memref<128x1xf32, #tpu.memory_space<vmem>>, %arg8: memref<1x64x256xf32, #tpu.memory_space<vmem>>) attributes {dimension_semantics = [#tpu.dimension_semantics<parallel>, #tpu.dimension_semantics<parallel>], iteration_bounds = array<i64: 2, 1>, scalar_prefetch = 0 : i64, scratch_operands = 0 : i64, tpu.core_type = #tpu.core_type<tc>, window_params = [{transform_indices = @transform_0, window_bounds = array<i64: 1, 64, 256>}, {transform_indices = @transform_1, window_bounds = array<i64: 1, 32, 256>}, {pipeline_mode = #tpu.pipeline_mode<synchronous>, transform_indices = @transform_2, window_bounds = array<i64: 64, 32>}, {pipeline_mode = #tpu.pipeline_mode<synchronous>, transform_indices = @transform_3, window_bounds = array<i64: 64, 1>}, {pipeline_mode = #tpu.pipeline_mode<synchronous>, transform_indices = @transform_4, window_bounds = array<i64: 128, 64>}, {pipeline_mode = #tpu.pipeline_mode<synchronous>, transform_indices = @transform_5, window_bounds = array<i64: 128, 1>}, {transform_indices = @transform_6, window_bounds = array<i64: 1, 64, 256>}]} {
    %c0 = arith.constant 0 : index
    %c0_0 = arith.constant 0 : index
    %c0_1 = arith.constant 0 : index
    %0 = vector.load %arg2[%c0, %c0_0, %c0_1] : memref<1x64x256xf32, #tpu.memory_space<vmem>>, vector<1x64x256xf32>
    %1 = vector.shape_cast %0 : vector<1x64x256xf32> to vector<64x256xf32>
    %c0_2 = arith.constant 0 : index
    %c0_3 = arith.constant 0 : index
    %c0_4 = arith.constant 0 : index
    %2 = vector.load %arg3[%c0_2, %c0_3, %c0_4] : memref<1x32x256xf32, #tpu.memory_space<vmem>>, vector<1x32x256xf32>
    %3 = vector.shape_cast %2 : vector<1x32x256xf32> to vector<32x256xf32>
    %c0_5 = arith.constant 0 : index
    %c0_6 = arith.constant 0 : index
    %4 = vector.load %arg4[%c0_5, %c0_6] : memref<64x32xf32, #tpu.memory_space<vmem>>, vector<64x32xf32>
    %cst = arith.constant dense<0.000000e+00> : vector<64x256xf32>
    %5 = tpu.matmul %4, %3, %cst {dimension_numbers = #tpu.dot_dimension_numbers<[1], [0], [0], [1], [0, 0, 1, 1], [], []>} : vector<64x32xf32>, vector<32x256xf32>, vector<64x256xf32> -> vector<64x256xf32>
    %c0_7 = arith.constant 0 : index
    %c0_8 = arith.constant 0 : index
    %6 = vector.load %arg5[%c0_7, %c0_8] : memref<64x1xf32, #tpu.memory_space<vmem>>, vector<64x1xf32>
    %7 = vector.broadcast %6 : vector<64x1xf32> to vector<64x256xf32>
    %8 = arith.addf %5, %7 : vector<64x256xf32>
    %cst_9 = arith.constant 0.000000e+00 : f32
    %9 = vector.broadcast %cst_9 : f32 to vector<64x256xf32>
    %10 = arith.cmpf oge, %8, %9 : vector<64x256xf32>
    %cst_10 = arith.constant 1.000000e-01 : f32
    %11 = vector.broadcast %cst_10 : f32 to vector<64x256xf32>
    %12 = arith.mulf %11, %8 : vector<64x256xf32>
    %13 = arith.select %10, %8, %12 : vector<64x256xi1>, vector<64x256xf32>
    %c0_11 = arith.constant 0 : index
    %c0_12 = arith.constant 0 : index
    %14 = vector.load %arg6[%c0_11, %c0_12] : memref<128x64xf32, #tpu.memory_space<vmem>>, vector<128x64xf32>
    %cst_13 = arith.constant dense<0.000000e+00> : vector<128x256xf32>
    %15 = tpu.matmul %14, %13, %cst_13 {dimension_numbers = #tpu.dot_dimension_numbers<[1], [0], [0], [1], [0, 0, 1, 1], [], []>} : vector<128x64xf32>, vector<64x256xf32>, vector<128x256xf32> -> vector<128x256xf32>
    %c0_14 = arith.constant 0 : index
    %c0_15 = arith.constant 0 : index
    %16 = vector.load %arg7[%c0_14, %c0_15] : memref<128x1xf32, #tpu.memory_space<vmem>>, vector<128x1xf32>
    %17 = vector.broadcast %16 : vector<128x1xf32> to vector<128x256xf32>
    %18 = arith.addf %15, %17 : vector<128x256xf32>
    %19 = vector.extract_strided_slice %18 {offsets = [0, 0], sizes = [64, 256], strides = [1, 1]} : vector<128x256xf32> to vector<64x256xf32>
    %20 = vector.extract_strided_slice %18 {offsets = [64, 0], sizes = [64, 256], strides = [1, 1]} : vector<128x256xf32> to vector<64x256xf32>
    %21 = arith.mulf %1, %19 : vector<64x256xf32>
    %22 = arith.addf %21, %20 : vector<64x256xf32>
    %c0_16 = arith.constant 0 : index
    %c0_17 = arith.constant 0 : index
    %c0_18 = arith.constant 0 : index
    %23 = vector.load %arg8[%c0_16, %c0_17, %c0_18] : memref<1x64x256xf32, #tpu.memory_space<vmem>>, vector<1x64x256xf32>
    %24 = vector.shape_cast %23 : vector<1x64x256xf32> to vector<64x256xf32>
    %25 = vector.shape_cast %22 : vector<64x256xf32> to vector<1x64x256xf32>
    tpu.vector_store %arg8[%c0_16, %c0_17, %c0_18], %25 {strides = array<i32>} : memref<1x64x256xf32, #tpu.memory_space<vmem>>, vector<1x64x256xf32>,
    return
  }
  func.func @transform_0(%arg0: i32, %arg1: i32) -> (i32, i32, i32) {
    %c0_i32 = arith.constant 0 : i32
    %c0_i32_0 = arith.constant 0 : i32
    return %arg0, %c0_i32, %arg1 : i32, i32, i32
  }
  func.func @transform_1(%arg0: i32, %arg1: i32) -> (i32, i32, i32) {
    %c0_i32 = arith.constant 0 : i32
    %c0_i32_0 = arith.constant 0 : i32
    return %arg0, %c0_i32, %arg1 : i32, i32, i32
  }
  func.func @transform_2(%arg0: i32, %arg1: i32) -> (i32, i32) {
    %c0_i32 = arith.constant 0 : i32
    %c0_i32_0 = arith.constant 0 : i32
    %c0_i32_1 = arith.constant 0 : i32
    return %c0_i32, %c0_i32_0 : i32, i32
  }
  func.func @transform_3(%arg0: i32, %arg1: i32) -> (i32, i32) {
    %c0_i32 = arith.constant 0 : i32
    %c0_i32_0 = arith.constant 0 : i32
    %c0_i32_1 = arith.constant 0 : i32
    return %c0_i32, %c0_i32_0 : i32, i32
  }
  func.func @transform_4(%arg0: i32, %arg1: i32) -> (i32, i32) {
    %c0_i32 = arith.constant 0 : i32
    %c0_i32_0 = arith.constant 0 : i32
    %c0_i32_1 = arith.constant 0 : i32
    return %c0_i32, %c0_i32_0 : i32, i32
  }
  func.func @transform_5(%arg0: i32, %arg1: i32) -> (i32, i32) {
    %c0_i32 = arith.constant 0 : i32
    %c0_i32_0 = arith.constant 0 : i32
    %c0_i32_1 = arith.constant 0 : i32
    return %c0_i32, %c0_i32_0 : i32, i32
  }
  func.func @transform_6(%arg0: i32, %arg1: i32) -> (i32, i32, i32) {
    %c0_i32 = arith.constant 0 : i32
    %c0_i32_0 = arith.constant 0 : i32
    return %arg0, %c0_i32, %arg1 : i32, i32, i32
  }
}

</mosaic_0001>

<bundles_post_ra>
// kernel: tpu_custom_call.1
= control target key start
LH: loop header
LB: loop body
LE: loop exit
PB: predicated region body
PF: predicated region fallthrough
CT: control target
= control target key end

     0   :  { %11 = vsyncpa [#allocation3], 0  ;;  %s1702_s0 = inlined_call_operand.vmem [shape: f32[2,64,256], index: 0, kind: input, shape index: {}]   ;;  %s1703_s1 = inlined_call_operand.vmem [shape: f32[2,32,256], index: 1, kind: input, shape index: {}]   ;;  %s1704_s2 = inlined_call_operand.vmem [shape: f32[64,32], index: 2, kind: input, shape index: {}]   ;;  %s1705_s3 = inlined_call_operand.vmem [shape: f32[64,1], index: 3, kind: input, shape index: {}]   ;;  %s1706_s4 = inlined_call_operand.vmem [shape: f32[128,64], index: 4, kind: input, shape index: {}]   ;;  %s1707_s5 = inlined_call_operand.vmem [shape: f32[128,1], index: 5, kind: input, shape index: {}]   ;;  %s1708_s6 = inlined_call_operand.hbm [shape: f32[2,64,256], index: 6, kind: output, shape index: {}]  }
   0x1   :  { %13 = vsyncpa [#allocation3 + $0x1], 0  ;;  %s1321_s21 = smov 0   ;;  %s1323_s22 = smov 0  }
   0x2   :  { %s1325_s23 = smov 0   ;;  %s1327_s24 = smov 0  }
   0x3   :  { %s1329_s25 = smov 0   ;;  %s1331_s26 = smov 0  }
   0x4 LB: > { %s1066_s27 = sadd.s32 4294967295, %s1279_s26   ;;  %s1067_s28 = sadd.s32 4294967294, %s1279_s26   ;;  %s1279_s26 = sphi %s1331_s26, %s19_s26   ;;  %s1275_s25 = sphi %s1329_s25, %s1715_s25   ;;  %s1271_s24 = sphi %s1327_s24, %s1714_s24   ;;  %s1267_s23 = sphi %s1325_s23, %s1713_s23   ;;  %s1263_s22 = sphi %s1323_s22, %s1712_s22   ;;  %s1259_s21 = sphi %s1321_s21, %s1711_s21  }
   0x5   : > { %s31_s29 = sadd.s32 1, %s1275_s25  ;;  %s180_s30 = sadd.s32 1, %s1267_s23 }
   0x6   : > { %p33_p0 = scmp.ge.s32.totalorder %s31_s29, 2  ;;  %p190_p1 = scmp.ne.s32.totalorder %s1267_s23, %s1263_s22 }
   0x7   : > { %p191_p2 = scmp.eq.s32.totalorder %s1066_s27, 1  ;;  %p196_p3 = scmp.ne.s32.totalorder %s1263_s22, %s1259_s21 }
   0x8   : > { %s1717_s29 = smov (%p33_p0, %s31_s29), 0  ;;  %p197_p5 = scmp.eq.s32.totalorder %s1067_s28, 1 }
   0x9   : > { %p1361_p4 = por %p191_p2, %p190_p1  ;;  %s175_s8 = ssub.s32 %s1275_s25, %s1717_s29 }
   0xa   : > { %p1070_p6 = scmp.ge.s32.totalorder %s1279_s26, 1  ;;  %p178_p7 = scmp.eq.s32.totalorder %s175_s8, 0 }
   0xb   : > { %p1368_p8 = por %p197_p5, %p196_p3  ;;  %p253_p9 = scmp.lt.s32.totalorder %s1279_s26, 3 }
   0xc   : > { %s1374_s10 = scalar_select %p178_p7, %s1267_s23, %s180_s30  }
   0xd   : > { %p254_p10 = pnand %p1070_p6, %p253_p9 }
   0xe   : > { %p297_p11 = scmp.lt.s32.totalorder (!%p254_p10), %s1271_s24, 1  ;;  %v1281_v0 = vmov (!%p254_p10), 0.0   ;;  %v1282_v1 = vmov (!%p254_p10), 0   ;;  %v349_v2 = vld [vmem:[%s1705_s3] sm:$0xff] (!%p254_p10)  ;;  %v351_v3 = vld [vmem:[%s1705_s3 + $0x10] sm:$0xff] (!%p254_p10)  ;;  %v350_v4 = vld [vmem:[%s1705_s3 + $0x8] sm:$0xff] (!%p254_p10) }
   0xf   : > { %257 = sbr.rel (%p254_p10) target bundleno = 561 (0x231), region = 44  ;;  %486 = vmatprep.mubr.f32.mxu0 (!%p254_p10), %v1281_v0  ;;  %838 = vmatprep.mubr.f32.mxu1 (!%p254_p10), %v1281_v0  ;;  %v352_v5 = vld [vmem:[%s1705_s3 + $0x18] sm:$0xff] (!%p254_p10)  ;;  %v353_v17 = vld [vmem:[%s1705_s3 + $0x20] sm:$0xff] (!%p254_p10)  ;;  %v354_v18 = vld [vmem:[%s1705_s3 + $0x28] sm:$0xff] (!%p254_p10)  ;;  %vm397_vm0 = vcmask (!%p254_p10), 261120   ;;  %s1107_s14 = sshll.u32 (!%p254_p10), %s1271_s24, 11 }
  0x10   : > { %1199 = vset.pattern.permute.xlu0 (!%p254_p10), %v1282_v1  ;;  %1200 = vset.pattern.permute.xlu1 (!%p254_p10), %v1282_v1  ;;  %v355_v20 = vld [vmem:[%s1705_s3 + $0x30] sm:$0xff] (!%p254_p10)  ;;  %v356_v21 = vld [vmem:[%s1705_s3 + $0x38] sm:$0xff] (!%p254_p10)  ;;  %v341_v22 = vld [vmem:[%s1704_s2] sm:$0xff] (!%p254_p10)  ;;  %s1647_s18 = scalar_lea.hbm (!%p254_p10), %s1708_s6, %s1107_s14  ;;  %s1283_s20 = smov (!%p254_p10), [#allocation2]  }
  0x11   : > { %359 = vperm.xlu0 (!%p254_p10), %1199, %v349_v2   ;;  %369 = vperm.xlu1 (!%p254_p10), %1200, %v351_v3   ;;  %v599_v23 = vld [vmem:[%s1707_s5] sm:$0xff] (!%p254_p10)  ;;  %v600_v24 = vld [vmem:[%s1707_s5 + $0x8] sm:$0xff] (!%p254_p10)  ;;  %v601_v26 = vld [vmem:[%s1707_s5 + $0x10] sm:$0xff] (!%p254_p10) }
  0x12   : > { %v342_v25 = vld [vmem:[%s1704_s2 + $0x8] sm:$0xff] (!%p254_p10)  ;;  %v602_v27 = vld [vmem:[%s1707_s5 + $0x18] sm:$0xff] (!%p254_p10)  ;;  %v343_v28 = vld [vmem:[%s1704_s2 + $0x10] sm:$0xff] (!%p254_p10) }
  0x13   : > { %v603_v29 = vld [vmem:[%s1707_s5 + $0x20] sm:$0xff] (!%p254_p10)  ;;  %v604_v30 = vld [vmem:[%s1707_s5 + $0x28] sm:$0xff] (!%p254_p10)  ;;  %v344_v31 = vld [vmem:[%s1704_s2 + $0x18] sm:$0xff] (!%p254_p10) }
  0x14   : > { %v605_v32 = vld [vmem:[%s1707_s5 + $0x30] sm:$0xff] (!%p254_p10)  ;;  %v606_v33 = vld [vmem:[%s1707_s5 + $0x38] sm:$0xff] (!%p254_p10)  ;;  %v345_v34 = vld [vmem:[%s1704_s2 + $0x20] sm:$0xff] (!%p254_p10) }
  0x15   : > { %364 = vperm.xlu0 (!%p254_p10), %1199, %v350_v4   ;;  %374 = vperm.xlu1 (!%p254_p10), %1200, %v352_v5   ;;  %v607_v35 = vld [vmem:[%s1707_s5 + $0x40] sm:$0xff] (!%p254_p10)  ;;  %v608_v36 = vld [vmem:[%s1707_s5 + $0x48] sm:$0xff] (!%p254_p10)  ;;  %v609_v38 = vld [vmem:[%s1707_s5 + $0x50] sm:$0xff] (!%p254_p10) }
  0x16   : > { %s1380_s11 = scalar_select %p297_p11, %s1271_s24, 1  ;;  %v346_v37 = vld [vmem:[%s1704_s2 + $0x28] sm:$0xff]  ;;  %v610_v39 = vld [vmem:[%s1707_s5 + $0x58] sm:$0xff]  ;;  %v347_v40 = vld [vmem:[%s1704_s2 + $0x30] sm:$0xff] }
  0x17   : > { %v611_v41 = vld [vmem:[%s1707_s5 + $0x60] sm:$0xff]  ;;  %v612_v42 = vld [vmem:[%s1707_s5 + $0x68] sm:$0xff]  ;;  %v348_v43 = vld [vmem:[%s1704_s2 + $0x38] sm:$0xff] }
  0x18   : > { %s1106_s16 = sshll.u32 %s1380_s11, 6  ;;  %v613_v44 = vld [vmem:[%s1707_s5 + $0x70] sm:$0xff]  ;;  %v614_v45 = vld [vmem:[%s1707_s5 + $0x78] sm:$0xff] }
  0x19   : > { %s314_s27 = scalar_lea.vmem %s1703_s1, %s1106_s16  ;;  %379 = vperm.xlu0 %1199, %v353_v17   ;;  %384 = vperm.xlu1 %1200, %v354_v18  }
  0x1a   : > { %v334_v6 = vld [vmem:[%s314_s27 + $0x8] sm:$0xff]  ;;  %v336_v7 = vld [vmem:[%s314_s27 + $0x18] sm:$0xff]  ;;  %v333_v8 = vld [vmem:[%s314_s27] sm:$0xff] }
  0x1b   : > { %v1108_v9 = vpack.c.bf16 %v336_v7, %v334_v6  ;;  %v335_v10 = vld [vmem:[%s314_s27 + $0x10] sm:$0xff]  ;;  %v338_v11 = vld [vmem:[%s314_s27 + $0x28] sm:$0xff]  ;;  %v340_v12 = vld [vmem:[%s314_s27 + $0x38] sm:$0xff] }
  0x1c   : > { %v1110_v13 = vpack.c.bf16 %v335_v10, %v333_v8  ;;  %v1112_v14 = vpack.c.bf16 %v340_v12, %v338_v11  ;;  %v337_v15 = vld [vmem:[%s314_s27 + $0x20] sm:$0xff]  ;;  %v339_v16 = vld [vmem:[%s314_s27 + $0x30] sm:$0xff]  ;;  %s1105_s27 = sshll.u32 %s1380_s11, 7  ;;  %s293_s11 = sand.u32 1, %s1263_s22  }
  0x1d   : > { %1109 = vmatprep.subr.bf16.mxu0 %v1108_v9  ;;  %v1114_v19 = vpack.c.bf16 %v339_v16, %v337_v15  ;;  %389 = vperm.xlu0 %1199, %v355_v20   ;;  %s1582_s8 = scalar_lea.vmem %s1702_s0, %s1105_s27  ;;  %s1071_s12 = sshll.u32 %s293_s11, 7 }
  0x1e   : > { %1111 = vmatpush1.bf16.msra.mxu0 %v1110_v13  ;;  %394 = vperm.xlu1 %1200, %v356_v21   ;;  %s1618_s13 = scalar_lea.vmem [#allocation2], %s1071_s12  ;;  %s1656_s24 = scalar_lea.sflag [#allocation3], %s293_s11 }
  0x1f   : > { %1113 = vmatprep.subr.bf16.mxu0 %v1112_v14  ;;  %s969_s15 = sshll.u32 %s1618_s13, 4  ;;  %s1205_s27 = sshll.u32 %s1283_s20, 4  ;;  %s1649_s15 = int_to_ptr.vmem [resolvable:$true] %s969_s15  ;;  %s1206_s27 = int_to_ptr.vmem [resolvable:$false] %s1205_s27 }
  0x20   : > { %s1201_s19 = scalar_lea.vmem %s1649_s15, 2048  ;;  %s1207_s28 = scalar_lea.vmem %s1206_s27, 4096 }
  0x21   : > { %617 = vperm.xlu0 %1199, %v599_v23   ;;  %p1202_p12 = scmp.ne.s32.totalorder %s1649_s15, %s1201_s19  ;;  %p1208_p1 = scmp.lt.s32.totalorder %s1649_s15, %s1206_s27 }
  0x22   : > { %1115 = vmatpush1.bf16.msra.mxu0 %v1114_v19  ;;  %622 = vperm.xlu1 %1200, %v600_v24   ;;  %p1209_p2 = scmp.lt.s32.totalorder %s1207_s28, %s1201_s19 }
  0x23   : > { %p1203_p13 = pnand %p1202_p12, %p1361_p4 }
  0x24   : > { %p1210_p3 = por %p1209_p2, %p1208_p1 }
  0x25   : > { %1076 = vmatmul.mubr.msk.f32.vlgmr.msra.gmra.mrb[0].mxu0 %vm397_vm0, %v341_v22  ;;  %627 = vperm.xlu0 %1199, %v601_v26   ;;  %p1204_p0 = pneg %p1203_p13 }
  0x26   : > { %492 = vmatprep.mubr.f32.mxu0 %v1281_v0  ;;  %632 = vperm.xlu1 %1200, %v602_v27  }
  0x27   : > { %p1211_p5 = pnand %p1210_p3, %p1204_p0 }
  0x29   : > { %1077 = vmatmul.mubr.msk.f32.gmra.mrb[2].mxu0 %vm397_vm0, %v342_v25  ;;  %637 = vperm.xlu0 %1199, %v603_v29  }
  0x2a   : > { %498 = vmatprep.mubr.f32.mxu0 %v1281_v0  ;;  %642 = vperm.xlu1 %1200, %v604_v30  }
  0x2d   : > { %1078 = vmatmul.mubr.msk.f32.gmra.mrb[4].mxu0 %vm397_vm0, %v343_v28  ;;  %647 = vperm.xlu0 %1199, %v605_v32  }
  0x2e   : > { %504 = vmatprep.mubr.f32.mxu0 %v1281_v0  ;;  %652 = vperm.xlu1 %1200, %v606_v33  }
  0x31   : > { %1079 = vmatmul.mubr.msk.f32.gmra.mrb[6].mxu0 %vm397_vm0, %v344_v31  ;;  %657 = vperm.xlu0 %1199, %v607_v35  }
  0x32   : > { %510 = vmatprep.mubr.f32.mxu0 %v1281_v0  ;;  %662 = vperm.xlu1 %1200, %v608_v36  }
  0x35   : > { %1080 = vmatmul.mubr.msk.f32.gmra.mrb[8].mxu0 %vm397_vm0, %v345_v34  ;;  %667 = vperm.xlu0 %1199, %v609_v38  }
  0x36   : > { %516 = vmatprep.mubr.f32.mxu0 %v1281_v0  ;;  %672 = vperm.xlu1 %1200, %v610_v39  }
  0x39   : > { %1081 = vmatmul.mubr.msk.f32.gmra.mrb[10].mxu0 %vm397_vm0, %v346_v37  ;;  %677 = vperm.xlu0 %1199, %v611_v41  }
  0x3a   : > { %522 = vmatprep.mubr.f32.mxu0 %v1281_v0  ;;  %682 = vperm.xlu1 %1200, %v612_v42  }
  0x3d   : > { %1082 = vmatmul.mubr.msk.f32.gmra.mrb[12].mxu0 %vm397_vm0, %v347_v40  ;;  %687 = vperm.xlu0 %1199, %v613_v44  }
  0x3e   : > { %528 = vmatprep.mubr.f32.mxu0 %v1281_v0  ;;  %692 = vperm.xlu1 %1200, %v614_v45  }
  0x41   : > { %1083 = vmatmul.mubr.msk.f32.gmra.mrb[14].mxu0 %vm397_vm0, %v348_v43 }
  0x42   : > { %808 = vmatprep.mubr.f32.mxu0 %v1281_v0 }
  0x90   : > { %v360_v46 = vpop.permute.xlu0 %359  ;;  %v370_v56 = vpop.permute.xlu1 %369 }
  0x94   : > { %v365_v51 = vpop.permute.xlu0 %364  ;;  %v375_v8 = vpop.permute.xlu1 %374 }
  0x98   : > { %v380_v16 = vpop.permute.xlu0 %379  ;;  %v385_v28 = vpop.permute.xlu1 %384 }
  0x9c   : > { %v390_v36 = vpop.permute.xlu0 %389 }
  0xf8   : > { %v488_v47 = vpop.f32.mrb[0].mxu0 }
  0xf9   : > { %v489_v48 = vadd.f32 %v488_v47, %v360_v46  ;;  %v490_v49 = vpop.f32.mrb[1].mxu0 }
  0xfa   : > { %v491_v50 = vadd.f32 %v490_v49, %v360_v46 }
  0xfb   : > { %v551_v53 = vmul.f32 0.1, %v489_v48  ;;  %vm535_vm1 = vcmp.ge.f32.partialorder %v489_v48, 0.0 }
  0xfc   : > { %v494_v52 = vpop.f32.mrb[2].mxu0  ;;  %v552_v57 = vmul.f32 0.1, %v491_v50  ;;  %vm536_vm2 = vcmp.ge.f32.partialorder %v491_v50, 0.0 }
  0xfd   : > { %v495_v54 = vadd.f32 %v494_v52, %v365_v51  ;;  %v496_v55 = vpop.f32.mrb[3].mxu0  ;;  %v567_v62 = vsel %vm535_vm1, %v489_v48, %v551_v53  ;;  %v395_v48 = vpop.permute.xlu1 %394  ;;  %vm695_vm1 = vcmask 523264  }
  0xfe   : > { %v497_v58 = vadd.f32 %v496_v55, %v365_v51  ;;  %v568_v5 = vsel %vm536_vm2, %v491_v50, %v552_v57 }
  0xff   : > { %vm537_vm3 = vcmp.ge.f32.partialorder %v495_v54, 0.0  ;;  %v553_v59 = vmul.f32 0.1, %v495_v54 }
 0x100   : > { %vm538_vm4 = vcmp.ge.f32.partialorder %v497_v58, 0.0  ;;  %v554_v60 = vmul.f32 0.1, %v497_v58  ;;  %v500_v61 = vpop.f32.mrb[4].mxu0 }
 0x101   : > { %v569_v63 = vsel %vm537_vm3, %v495_v54, %v553_v59  ;;  %v501_v1 = vadd.f32 %v500_v61, %v370_v56  ;;  %v502_v2 = vpop.f32.mrb[5].mxu0 }
 0x102   : > { %v1118_v3 = vpack.c.bf16 %v569_v63, %v567_v62  ;;  %v503_v4 = vadd.f32 %v502_v2, %v370_v56  ;;  %v570_v6 = vsel %vm538_vm4, %v497_v58, %v554_v60  ;;  %v583_v63 = vld [vmem:[%s1706_s4] sm:$0xff]  ;;  %v584_v2 = vld [vmem:[%s1706_s4 + $0x8] sm:$0xff] }
 0x103   : > { %v1116_v7 = vpack.c.bf16 %v570_v6, %v568_v5  ;;  %v555_v10 = vmul.f32 0.1, %v501_v1  ;;  %vm539_vm5 = vcmp.ge.f32.partialorder %v501_v1, 0.0  ;;  %v590_v5 = vld [vmem:[%s1706_s4 + $0x38] sm:$0xff] }
 0x104   : > { %v506_v9 = vpop.f32.mrb[6].mxu0  ;;  %v556_v13 = vmul.f32 0.1, %v503_v4  ;;  %vm540_vm6 = vcmp.ge.f32.partialorder %v503_v4, 0.0  ;;  %v586_v6 = vld [vmem:[%s1706_s4 + $0x18] sm:$0xff] }
 0x105   : > { %v507_v11 = vadd.f32 %v506_v9, %v375_v8  ;;  %v508_v12 = vpop.f32.mrb[7].mxu0  ;;  %1117 = vmatprep.subr.bf16.mxu0 %v1116_v7  ;;  %1132 = vmatprep.subr.bf16.mxu1 %v1116_v7  ;;  %v571_v19 = vsel %vm539_vm5, %v501_v1, %v555_v10  ;;  %v588_v1 = vld [vmem:[%s1706_s4 + $0x28] sm:$0xff]  ;;  %v591_v7 = vld [vmem:[%s1706_s4 + $0x40] sm:$0xff]  ;;  %v593_v10 = vld [vmem:[%s1706_s4 + $0x50] sm:$0xff] }
 0x106   : > { %v509_v14 = vadd.f32 %v508_v12, %v375_v8  ;;  %1119 = vmatpush1.bf16.msra.mxu0 %v1118_v3  ;;  %1136 = vmatpush1.bf16.msra.mxu1 %v1118_v3  ;;  %v572_v25 = vsel %vm540_vm6, %v503_v4, %v556_v13  ;;  %v589_v3 = vld [vmem:[%s1706_s4 + $0x30] sm:$0xff]  ;;  %v587_v8 = vld [vmem:[%s1706_s4 + $0x20] sm:$0xff]  ;;  %v592_v9 = vld [vmem:[%s1706_s4 + $0x48] sm:$0xff] }
 0x107   : > { %vm541_vm7 = vcmp.ge.f32.partialorder %v507_v11, 0.0  ;;  %v557_v15 = vmul.f32 0.1, %v507_v11  ;;  %v585_v4 = vld [vmem:[%s1706_s4 + $0x10] sm:$0xff]  ;;  %v595_v12 = vld [vmem:[%s1706_s4 + $0x60] sm:$0xff]  ;;  %v596_v13 = vld [vmem:[%s1706_s4 + $0x68] sm:$0xff] }
 0x108   : > { %vm542_vm8 = vcmp.ge.f32.partialorder %v509_v14, 0.0  ;;  %v558_v17 = vmul.f32 0.1, %v509_v14  ;;  %v512_v18 = vpop.f32.mrb[8].mxu0 }
 0x109   : > { %v573_v20 = vsel %vm541_vm7, %v507_v11, %v557_v15  ;;  %v513_v21 = vadd.f32 %v512_v18, %v380_v16  ;;  %v514_v22 = vpop.f32.mrb[9].mxu0  ;;  %v594_v11 = vld [vmem:[%s1706_s4 + $0x58] sm:$0xff] }
 0x10a   : > { %v1122_v23 = vpack.c.bf16 %v573_v20, %v571_v19  ;;  %v515_v24 = vadd.f32 %v514_v22, %v380_v16  ;;  %v574_v26 = vsel %vm542_vm8, %v509_v14, %v558_v17  ;;  %v597_v14 = vld [vmem:[%s1706_s4 + $0x70] sm:$0xff]  ;;  %v598_v15 = vld [vmem:[%s1706_s4 + $0x78] sm:$0xff]  ;;  %v618_v16 = vpop.permute.xlu0 %617  ;;  %v623_v17 = vpop.permute.xlu1 %622 }
 0x10b   : > { %v1120_v27 = vpack.c.bf16 %v574_v26, %v572_v25  ;;  %v559_v30 = vmul.f32 0.1, %v513_v21  ;;  %vm543_vm9 = vcmp.ge.f32.partialorder %v513_v21, 0.0 }
 0x10c   : > { %v518_v29 = vpop.f32.mrb[10].mxu0  ;;  %v560_v33 = vmul.f32 0.1, %v515_v24  ;;  %vm544_vm10 = vcmp.ge.f32.partialorder %v515_v24, 0.0 }
 0x10d   : > { %v519_v31 = vadd.f32 %v518_v29, %v385_v28  ;;  %v520_v32 = vpop.f32.mrb[11].mxu0  ;;  %1121 = vmatprep.subr.bf16.mxu0 %v1120_v27  ;;  %1133 = vmatprep.subr.bf16.mxu1 %v1120_v27  ;;  %v575_v39 = vsel %vm543_vm9, %v513_v21, %v559_v30  ;;  %v317_v21 = vld [vmem:[%s1582_s8] sm:$0xff]  ;;  %v318_v27 = vld [vmem:[%s1582_s8 + $0x8] sm:$0xff]  ;;  %v328_v29 = vld [vmem:[%s1582_s8 + $0x58] sm:$0xff] }
 0x10e   : > { %v521_v34 = vadd.f32 %v520_v32, %v385_v28  ;;  %1123 = vmatpush1.bf16.msra.mxu0 %v1122_v23  ;;  %1137 = vmatpush1.bf16.msra.mxu1 %v1122_v23  ;;  %v576_v45 = vsel %vm544_vm10, %v515_v24, %v560_v33  ;;  %v628_v18 = vpop.permute.xlu0 %627  ;;  %v1576_v19 = vpop.permute.xlu1 %632  ;;  %v327_v23 = vld [vmem:[%s1582_s8 + $0x50] sm:$0xff] }
 0x10f   : > { %vm545_vm11 = vcmp.ge.f32.partialorder %v519_v31, 0.0  ;;  %v561_v35 = vmul.f32 0.1, %v519_v31 }
 0x110   : > { %vm546_vm12 = vcmp.ge.f32.partialorder %v521_v34, 0.0  ;;  %v562_v37 = vmul.f32 0.1, %v521_v34  ;;  %v524_v38 = vpop.f32.mrb[12].mxu0 }
 0x111   : > { %v577_v40 = vsel %vm545_vm11, %v519_v31, %v561_v35  ;;  %v525_v41 = vadd.f32 %v524_v38, %v390_v36  ;;  %v526_v42 = vpop.f32.mrb[13].mxu0  ;;  %v319_v38 = vld [vmem:[%s1582_s8 + $0x10] sm:$0xff] }
 0x112   : > { %v1126_v43 = vpack.c.bf16 %v577_v40, %v575_v39  ;;  %v527_v44 = vadd.f32 %v526_v42, %v390_v36  ;;  %v578_v46 = vsel %vm546_vm12, %v521_v34, %v562_v37  ;;  %v643_v20 = vpop.permute.xlu1 %642  ;;  %v329_v40 = vld [vmem:[%s1582_s8 + $0x60] sm:$0xff] }
 0x113   : > { %v1124_v47 = vpack.c.bf16 %v578_v46, %v576_v45  ;;  %v563_v50 = vmul.f32 0.1, %v525_v41  ;;  %vm547_vm13 = vcmp.ge.f32.partialorder %v525_v41, 0.0  ;;  %v330_v46 = vld [vmem:[%s1582_s8 + $0x68] sm:$0xff] }
 0x114   : > { %v530_v49 = vpop.f32.mrb[14].mxu0  ;;  %v564_v53 = vmul.f32 0.1, %v527_v44  ;;  %vm548_vm14 = vcmp.ge.f32.partialorder %v527_v44, 0.0 }
 0x115   : > { %v531_v51 = vadd.f32 %v530_v49, %v395_v48  ;;  %v532_v52 = vpop.f32.mrb[15].mxu0  ;;  %1125 = vmatprep.subr.bf16.mxu0 %v1124_v47  ;;  %1134 = vmatprep.subr.bf16.mxu1 %v1124_v47  ;;  %v579_v57 = vsel %vm547_vm13, %v525_v41, %v563_v50 }
 0x116   : > { %v533_v54 = vadd.f32 %v532_v52, %v395_v48  ;;  %1127 = vmatpush1.bf16.msra.mxu0 %v1126_v43  ;;  %1138 = vmatpush1.bf16.msra.mxu1 %v1126_v43  ;;  %v580_v60 = vsel %vm548_vm14, %v527_v44, %v564_v53  ;;  %v320_v44 = vld [vmem:[%s1582_s8 + $0x18] sm:$0xff]  ;;  %v653_v50 = vpop.permute.xlu1 %652 }
 0x117   : > { %vm549_vm15 = vcmp.ge.f32.partialorder %v531_v51, 0.0  ;;  %v565_v55 = vmul.f32 0.1, %v531_v51 }
 0x118   : > { %vm550_vm0 = vcmp.ge.f32.partialorder %v533_v54, 0.0  ;;  %v566_v56 = vmul.f32 0.1, %v533_v54 }
 0x119   : > { %v581_v58 = vsel %vm549_vm15, %v531_v51, %v565_v55  ;;  %v321_v55 = vld [vmem:[%s1582_s8 + $0x20] sm:$0xff] }
 0x11a   : > { %v1130_v59 = vpack.c.bf16 %v581_v58, %v579_v57  ;;  %v582_v61 = vsel %vm550_vm0, %v533_v54, %v566_v56  ;;  %v331_v57 = vld [vmem:[%s1582_s8 + $0x70] sm:$0xff] }
 0x11b   : > { %v1128_v62 = vpack.c.bf16 %v582_v61, %v580_v60  ;;  %v322_v61 = vld [vmem:[%s1582_s8 + $0x28] sm:$0xff] }
 0x11d   : > { %1129 = vmatprep.subr.bf16.mxu0 %v1128_v62  ;;  %1135 = vmatprep.subr.bf16.mxu1 %v1128_v62 }
 0x11e   : > { %1131 = vmatpush1.bf16.msra.mxu0 %v1130_v59  ;;  %1139 = vmatpush1.bf16.msra.mxu1 %v1130_v59 }
 0x121   : > { %1084 = vmatmul.mubr.msk.f32.vlgmr.msra.gmra.mrb[16].mxu0 %vm695_vm1, %v583_v63  ;;  %1089 = vmatmul.mubr.msk.f32.vlgmr.msra.gmra.mrb[0].mxu1 %vm695_vm1, %v588_v1  ;;  %v332_v63 = vld [vmem:[%s1582_s8 + $0x78] sm:$0xff] }
 0x122   : > { %814 = vmatprep.mubr.f32.mxu0 %v1281_v0  ;;  %844 = vmatprep.mubr.f32.mxu1 %v1281_v0 }
 0x125   : > { %1085 = vmatmul.mubr.msk.f32.gmra.mrb[18].mxu0 %vm695_vm1, %v584_v2  ;;  %1090 = vmatmul.mubr.msk.f32.gmra.mrb[2].mxu1 %vm695_vm1, %v589_v3 }
 0x126   : > { %820 = vmatprep.mubr.f32.mxu0 %v1281_v0  ;;  %850 = vmatprep.mubr.f32.mxu1 %v1281_v0 }
 0x129   : > { %1086 = vmatmul.mubr.msk.f32.gmra.mrb[20].mxu0 %vm695_vm1, %v585_v4  ;;  %1091 = vmatmul.mubr.msk.f32.gmra.mrb[4].mxu1 %vm695_vm1, %v590_v5 }
 0x12a   : > { %826 = vmatprep.mubr.f32.mxu0 %v1281_v0  ;;  %856 = vmatprep.mubr.f32.mxu1 %v1281_v0 }
 0x12d   : > { %1087 = vmatmul.mubr.msk.f32.gmra.mrb[22].mxu0 %vm695_vm1, %v586_v6  ;;  %1092 = vmatmul.mubr.msk.f32.gmra.mrb[6].mxu1 %vm695_vm1, %v591_v7 }
 0x12e   : > { %832 = vmatprep.mubr.f32.mxu0 %v1281_v0  ;;  %862 = vmatprep.mubr.f32.mxu1 %v1281_v0 }
 0x131   : > { %1088 = vmatmul.mubr.msk.f32.gmra.mrb[24].mxu0 %vm695_vm1, %v587_v8  ;;  %1093 = vmatmul.mubr.msk.f32.gmra.mrb[8].mxu1 %vm695_vm1, %v592_v9  ;;  %v323_v9 = vld [vmem:[%s1582_s8 + $0x30] sm:$0xff] }
 0x132   : > { %868 = vmatprep.mubr.f32.mxu1 %v1281_v0 }
 0x135   : > { %1094 = vmatmul.mubr.msk.f32.gmra.mrb[10].mxu1 %vm695_vm1, %v593_v10 }
 0x136   : > { %874 = vmatprep.mubr.f32.mxu1 %v1281_v0 }
 0x139   : > { %1095 = vmatmul.mubr.msk.f32.gmra.mrb[12].mxu1 %vm695_vm1, %v594_v11 }
 0x13a   : > { %880 = vmatprep.mubr.f32.mxu1 %v1281_v0 }
 0x13d   : > { %1096 = vmatmul.mubr.msk.f32.gmra.mrb[14].mxu1 %vm695_vm1, %v595_v12 }
 0x13e   : > { %886 = vmatprep.mubr.f32.mxu1 %v1281_v0 }
 0x141   : > { %1097 = vmatmul.mubr.msk.f32.gmra.mrb[16].mxu1 %vm695_vm1, %v596_v13 }
 0x142   : > { %892 = vmatprep.mubr.f32.mxu1 %v1281_v0 }
 0x145   : > { %1098 = vmatmul.mubr.msk.f32.gmra.mrb[18].mxu1 %vm695_vm1, %v597_v14  ;;  %v324_v14 = vld [vmem:[%s1582_s8 + $0x38] sm:$0xff] }
 0x146   : > { %898 = vmatprep.mubr.f32.mxu1 %v1281_v0  ;;  %v1584_v0 = vpop.permute.xlu0 %637 }
 0x149   : > { %1099 = vmatmul.mubr.msk.f32.gmra.mrb[20].mxu1 %vm695_vm1, %v598_v15 }
 0x14a   : > { %v648_v33 = vpop.permute.xlu0 %647 }
 0x14e   : > { %v658_v4 = vpop.permute.xlu0 %657 }
 0x1f4   : > { %v810_v22 = vpop.f32.mrb[16].mxu0  ;;  %v840_v24 = vpop.f32.mrb[0].mxu1 }
 0x1f5   : > { %v811_v25 = vadd.f32 %v810_v22, %v618_v16  ;;  %v841_v26 = vadd.f32 %v840_v24, %v643_v20  ;;  %v812_v28 = vpop.f32.mrb[17].mxu0  ;;  %v842_v30 = vpop.f32.mrb[1].mxu1 }
 0x1f6   : > { %v813_v31 = vadd.f32 %v812_v28, %v618_v16  ;;  %v843_v32 = vadd.f32 %v842_v30, %v643_v20  ;;  %v663_v20 = vpop.permute.xlu1 %662 }
 0x1f7   : > { %v905_v34 = vmul.f32 %v811_v25, %v317_v21  ;;  %v1590_v35 = vmul.f32 %v841_v26, %v327_v23  ;;  %v325_v25 = vld [vmem:[%s1582_s8 + $0x40] sm:$0xff] }
 0x1f8   : > { %v906_v36 = vmul.f32 %v813_v31, %v318_v27  ;;  %v1592_v37 = vmul.f32 %v843_v32, %v328_v29  ;;  %v816_v39 = vpop.f32.mrb[18].mxu0  ;;  %v846_v41 = vpop.f32.mrb[2].mxu1 }
 0x1f9   : > { %v817_v42 = vadd.f32 %v816_v39, %v623_v17  ;;  %v847_v43 = vadd.f32 %v846_v41, %v648_v33  ;;  %v818_v45 = vpop.f32.mrb[19].mxu0  ;;  %v848_v47 = vpop.f32.mrb[3].mxu1 }
 0x1fa   : > { %v819_v48 = vadd.f32 %v818_v45, %v623_v17  ;;  %v849_v49 = vadd.f32 %v848_v47, %v648_v33 }
 0x1fb   : > { %v907_v51 = vmul.f32 %v817_v42, %v319_v38  ;;  %v1598_v52 = vmul.f32 %v847_v43, %v329_v40  ;;  %v668_v38 = vpop.permute.xlu0 %667 }
 0x1fc   : > { %v908_v53 = vmul.f32 %v819_v48, %v320_v44  ;;  %v1600_v54 = vmul.f32 %v849_v49, %v330_v46  ;;  %v822_v56 = vpop.f32.mrb[20].mxu0  ;;  %v852_v58 = vpop.f32.mrb[4].mxu1 }
 0x1fd   : > { %v823_v59 = vadd.f32 %v822_v56, %v628_v18  ;;  %v853_v60 = vadd.f32 %v852_v58, %v653_v50  ;;  %v824_v62 = vpop.f32.mrb[21].mxu0  ;;  %v854_v1 = vpop.f32.mrb[5].mxu1 }
 0x1fe   : > { %v825_v2 = vadd.f32 %v824_v62, %v628_v18  ;;  %v855_v3 = vadd.f32 %v854_v1, %v653_v50  ;;  %v673_v46 = vpop.permute.xlu1 %672 }
 0x1ff   : > { %v909_v5 = vmul.f32 %v823_v59, %v321_v55  ;;  %v1607_v6 = vmul.f32 %v853_v60, %v331_v57 }
 0x200   : > { %v910_v7 = vmul.f32 %v825_v2, %v322_v61  ;;  %v1611_v8 = vmul.f32 %v855_v3, %v332_v63  ;;  %v828_v10 = vpop.f32.mrb[22].mxu0  ;;  %v858_v11 = vpop.f32.mrb[6].mxu1 }
 0x201   : > { %v829_v12 = vadd.f32 %v828_v10, %v1576_v19  ;;  %v859_v13 = vadd.f32 %v858_v11, %v658_v4  ;;  %v830_v15 = vpop.f32.mrb[23].mxu0  ;;  %v860_v16 = vpop.f32.mrb[7].mxu1 }
 0x202   : > { %v831_v17 = vadd.f32 %v830_v15, %v1576_v19  ;;  %v861_v18 = vadd.f32 %v860_v16, %v658_v4  ;;  %v326_v19 = vld [vmem:[%s1582_s8 + $0x48] sm:$0xff]  ;;  %v683_v61 = vpop.permute.xlu1 %682 }
 0x203   : > { %v911_v21 = vmul.f32 %v829_v12, %v323_v9  ;;  %v921_v22 = vadd.f32 %v905_v34, %v859_v13 }
 0x204   : > { %v912_v23 = vmul.f32 %v831_v17, %v324_v14  ;;  %v922_v24 = vadd.f32 %v906_v36, %v861_v18  ;;  %v834_v26 = vpop.f32.mrb[24].mxu0  ;;  %v864_v27 = vpop.f32.mrb[8].mxu1 }
 0x205   : > { %937 = vst [vmem:[%s1618_s13] sm:$0xff] %v921_v22  ;;  %v835_v28 = vadd.f32 %v834_v26, %v1584_v0  ;;  %v865_v29 = vadd.f32 %v864_v27, %v663_v20  ;;  %v836_v30 = vpop.f32.mrb[25].mxu0  ;;  %v866_v31 = vpop.f32.mrb[9].mxu1 }
 0x206   : > { %938 = vst [vmem:[%s1618_s13 + $0x8] sm:$0xff] %v922_v24  ;;  %v837_v32 = vadd.f32 %v836_v30, %v1584_v0  ;;  %v867_v33 = vadd.f32 %v866_v31, %v663_v20  ;;  %v693_v14 = vpop.permute.xlu1 %692 }
 0x207   : > { %v913_v34 = vmul.f32 %v835_v28, %v325_v25  ;;  %v923_v36 = vadd.f32 %v907_v51, %v865_v29 }
 0x208   : > { %v914_v39 = vmul.f32 %v837_v32, %v326_v19  ;;  %v924_v40 = vadd.f32 %v908_v53, %v867_v33  ;;  %v870_v41 = vpop.f32.mrb[10].mxu1  ;;  %v678_v53 = vpop.permute.xlu0 %677 }
 0x209   : > { %939 = vst [vmem:[%s1618_s13 + $0x10] sm:$0xff] %v923_v36  ;;  %v871_v42 = vadd.f32 %v870_v41, %v668_v38  ;;  %v872_v43 = vpop.f32.mrb[11].mxu1 }
 0x20a   : > { %940 = vst [vmem:[%s1618_s13 + $0x18] sm:$0xff] %v924_v40  ;;  %v873_v44 = vadd.f32 %v872_v43, %v668_v38 }
 0x20b   : > { %v925_v45 = vadd.f32 %v909_v5, %v871_v42 }
 0x20c   : > { %v926_v47 = vadd.f32 %v910_v7, %v873_v44  ;;  %v876_v0 = vpop.f32.mrb[12].mxu1  ;;  %v688_v5 = vpop.permute.xlu0 %687 }
 0x20d   : > { %941 = vst [vmem:[%s1618_s13 + $0x20] sm:$0xff] %v925_v45  ;;  %v877_v48 = vadd.f32 %v876_v0, %v673_v46  ;;  %v878_v49 = vpop.f32.mrb[13].mxu1 }
 0x20e   : > { %942 = vst [vmem:[%s1618_s13 + $0x28] sm:$0xff] %v926_v47  ;;  %v879_v50 = vadd.f32 %v878_v49, %v673_v46 }
 0x20f   : > { %v927_v51 = vadd.f32 %v911_v21, %v877_v48 }
 0x210   : > { %v928_v55 = vadd.f32 %v912_v23, %v879_v50  ;;  %v882_v56 = vpop.f32.mrb[14].mxu1 }
 0x211   : > { %943 = vst [vmem:[%s1618_s13 + $0x30] sm:$0xff] %v927_v51  ;;  %v883_v57 = vadd.f32 %v882_v56, %v678_v53  ;;  %v884_v58 = vpop.f32.mrb[15].mxu1 }
 0x212   : > { %944 = vst [vmem:[%s1618_s13 + $0x38] sm:$0xff] %v928_v55  ;;  %v885_v59 = vadd.f32 %v884_v58, %v678_v53 }
 0x213   : > { %v929_v60 = vadd.f32 %v913_v34, %v883_v57 }
 0x214   : > { %v930_v62 = vadd.f32 %v914_v39, %v885_v59  ;;  %v888_v63 = vpop.f32.mrb[16].mxu1 }
 0x215   : > { %945 = vst [vmem:[%s1618_s13 + $0x40] sm:$0xff] %v929_v60  ;;  %v889_v1 = vadd.f32 %v888_v63, %v683_v61  ;;  %v890_v2 = vpop.f32.mrb[17].mxu1 }
 0x216   : > { %946 = vst [vmem:[%s1618_s13 + $0x48] sm:$0xff] %v930_v62  ;;  %v891_v3 = vadd.f32 %v890_v2, %v683_v61 }
 0x217   : > { %v931_v4 = vadd.f32 %v1590_v35, %v889_v1 }
 0x218   : > { %v932_v7 = vadd.f32 %v1592_v37, %v891_v3  ;;  %v894_v9 = vpop.f32.mrb[18].mxu1 }
 0x219   : > { %947 = vst [vmem:[%s1618_s13 + $0x50] sm:$0xff] %v931_v4  ;;  %v895_v10 = vadd.f32 %v894_v9, %v688_v5  ;;  %v896_v11 = vpop.f32.mrb[19].mxu1 }
 0x21a   : > { %948 = vst [vmem:[%s1618_s13 + $0x58] sm:$0xff] %v932_v7  ;;  %v897_v12 = vadd.f32 %v896_v11, %v688_v5 }
 0x21b   : > { %v933_v13 = vadd.f32 %v1598_v52, %v895_v10 }
 0x21c   : > { %v934_v15 = vadd.f32 %v1600_v54, %v897_v12  ;;  %v900_v16 = vpop.f32.mrb[20].mxu1 }
 0x21d   : > { %949 = vst [vmem:[%s1618_s13 + $0x60] sm:$0xff] %v933_v13  ;;  %v901_v35 = vadd.f32 %v900_v16, %v693_v14  ;;  %v902_v37 = vpop.f32.mrb[21].mxu1 }
 0x21e   : > { %950 = vst [vmem:[%s1618_s13 + $0x68] sm:$0xff] %v934_v15  ;;  %v903_v17 = vadd.f32 %v902_v37, %v693_v14 }
 0x21f   : > { %v935_v18 = vadd.f32 %v1607_v6, %v901_v35 }
 0x220   : > { %v936_v52 = vadd.f32 %v1611_v8, %v903_v17 }
 0x221   : > { %951 = vst [vmem:[%s1618_s13 + $0x70] sm:$0xff] %v935_v18 }
 0x222   : > { %952 = vst [vmem:[%s1618_s13 + $0x78] sm:$0xff] %v936_v52 }
 0x223   : > { %1214 = shalt.err (!%p1211_p5)
}
 0x224   : > { %s1215_s30 = scalar_lea.hbm %s1647_s18, 2048  ;;  %s1219_s12 = scalar_lea.hbm %s1708_s6, 4096 }
 0x225   : > { %p1216_p6 = scmp.ne.s32.totalorder %s1647_s18, %s1215_s30  ;;  %p1220_p10 = scmp.lt.u32.totalorder %s1647_s18, %s1708_s6 }
 0x226   : > { %p1221_p11 = scmp.lt.u32.totalorder %s1219_s12, %s1215_s30  ;;  %p1223_p13 = scmp.lt.u32.totalorder %s1215_s30, %s1647_s18 }
 0x227   : > { %p1217_p7 = pnand %p1216_p6, %p1361_p4 }
 0x228   : > { %p1222_p12 = por %p1221_p11, %p1220_p10 }
 0x229   : > { %p1218_p9 = pneg %p1217_p7 }
 0x22a   : > { %p1224_p0 = por %p1223_p13, %p1222_p12 }
 0x22c   : > { %p1225_p1 = pnand %p1224_p0, %p1218_p9 }
 0x22e   : > { %1228 = shalt.err (!%p1225_p1)
}
 0x22f   : > { %s1284_s16 = smov 256   ;;  %s1285_s17 = smov 16  }
 0x230   : > { %1140 = dma.vmem_to_hbm [thread:$0]  (%p1361_p4), %s1649_s15, 2048, %s1647_s18, %s1656_s24, %s1284_s16, %s1284_s16, %s1285_s17  }
 0x231 PF: > { %p1146_p2 = scmp.ge.s32.totalorder %s1279_s26, 2  ;;  %s984_s19 = sand.u32 1, %s1259_s21  }
 0x232   : > { %s985_s20 = scalar_lea.sflag [#allocation3], %s984_s19 }
 0x233   : > { %p1143_p3 = pnand %p1146_p2, %p1368_p8 }
 0x235   : > { %1254 = dma.done.wait (!%p1143_p3), %s985_s20, 2048  }
 0x236   : > { %1256 = vsyncadd (!%p1143_p3), %s985_s20, 4294965248  ;;  %s19_s26 = sadd.s32 1, %s1279_s26   ;;  %s1711_s21 = smov %s1263_s22 }
 0x237   : > { %p16_p5 = scmp.ge.s32.totalorder %s19_s26, 4   ;;  %s1712_s22 = smov %s1267_s23 }
 0x238   : > { %s1713_s23 = smov %s1374_s10  ;;  %s1714_s24 = smov %s1275_s25 }
 0x239   : > { %s1715_s25 = smov %s1717_s29  ;;  %18 = sbr.rel (!%p16_p5) target bundleno = 4 (0x4), region = 82 }
 0x240   :  { %990 = vsyncpa [#allocation3], 1 }
 0x241   :  { %992 = vsyncpa [#allocation3 + $0x1], 1 }

</bundles_post_ra>
